<compile_context>
chip_gen: v7x
topology: tpu7x:2x2x1
jax: 0.10.0
libtpu: 0.0.40
codegen_flags: <defaults>
</compile_context>

<pallas_src>
import numpy as np
import jax
import jax.numpy as jnp
from jax import lax
from jax.experimental import pallas as pl
from jax.experimental.pallas import tpu as pltpu


# ----------------------------------------------------------------------------
# Deterministic constant setup (numpy): fused spectral coefficients.
# ----------------------------------------------------------------------------
def fftfreqs_np(res):
    freqs = []
    for d in range(len(res) - 1):
        freqs.append(np.fft.fftfreq(res[d], d=1.0 / res[d]))
    freqs.append(np.fft.rfftfreq(res[-1], d=1.0 / res[-1]))
    omega = np.stack(np.meshgrid(*freqs, indexing="ij"), axis=-1)  # (r0, r1, rh, dim)
    return omega


def dpsr_coefficients_np(res, sig):
    """coef[d] = G * (2*pi*omega_d) / (-sum_d (2*pi*omega_d)^2 + 1e-6), flattened
    to (dim, r0, r1*rh) float32.  coef == 0 at DC, so Phi(DC) == 0 automatically."""
    omega = fftfreqs_np(res)                                                 # (r0,r1,rh,3)
    dis = np.sqrt(np.sum(omega.astype(np.float64) ** 2, axis=-1))            # f64 like ref
    g = np.exp(-0.5 * (sig * 2.0 * dis / res[0]) ** 2).astype(np.float32)    # (r0,r1,rh)
    om2pi = omega.astype(np.float32) * np.float32(2.0 * np.pi)               # (r0,r1,rh,3)
    lap = -np.sum(om2pi ** 2, axis=-1)                                       # (r0,r1,rh)
    coef = g[..., None] * om2pi / (lap[..., None] + np.float32(1e-6))        # (r0,r1,rh,3)
    coef = np.transpose(coef, (3, 0, 1, 2))                                  # (3,r0,r1,rh)
    r0, r1, rh = g.shape
    return np.ascontiguousarray(coef.reshape(3, r0, r1 * rh)).astype(np.float32)


# ----------------------------------------------------------------------------
# Trilinear corner helpers shared by rasterize / interp (plain JAX glue).
# ----------------------------------------------------------------------------
def _corner_setup(pts, size):
    # pts: (bs, npts, dim) in (0, 1); size: python tuple of grid resolutions
    dim = pts.shape[-1]
    size_f = jnp.asarray(size, dtype=pts.dtype)
    cubesize = 1.0 / size_f
    ind0 = jnp.floor(pts / cubesize).astype(jnp.int32)                   # (bs, npts, dim)
    ind1 = jnp.mod(jnp.ceil(pts / cubesize), size_f).astype(jnp.int32)
    com = np.stack(np.meshgrid(*([np.array([0, 1])] * dim), indexing="ij"),
                   axis=-1).reshape(-1, dim)                             # (2**dim, dim)
    com = jnp.asarray(com)
    ind_n = jnp.where(com[None, None] == 0, ind0[:, :, None, :], ind1[:, :, None, :])
    xyz0 = ind0.astype(pts.dtype) * cubesize
    xyz1 = (ind0.astype(pts.dtype) + 1.0) * cubesize
    pos_opp = jnp.where(com[None, None] == 0, xyz1[:, :, None, :], xyz0[:, :, None, :])
    dxyz = jnp.abs(pts[:, :, None, :] - pos_opp) / cubesize
    weights = jnp.prod(dxyz, axis=-1)                                    # (bs, npts, 2**dim)
    return ind_n, weights


def point_rasterize(pts, vals, size, weighted=False):
    # TODO(synk): data-dependent scatter-add has no clean Pallas equivalent; done in XLA.
    bs, npts, dim = pts.shape
    nf = vals.shape[-1]
    ind_n, weights = _corner_setup(pts, size)              # (bs,npts,8,dim), (bs,npts,8)
    vals_w = weights[..., None] * vals[:, :, None, :]      # (bs, npts, 8, nf)
    raster = jnp.zeros((bs, nf) + tuple(size), dtype=vals.dtype)
    b_idx = jnp.arange(bs)[:, None, None, None]
    f_idx = jnp.arange(nf)[None, None, None, :]
    i0 = ind_n[..., 0][..., None]
    i1 = ind_n[..., 1][..., None]
    i2 = ind_n[..., 2][..., None]
    raster = raster.at[b_idx, f_idx, i0, i1, i2].add(vals_w)
    if weighted:
        counts = jnp.zeros_like(raster).at[b_idx, f_idx, i0, i1, i2].add(
            jnp.ones_like(vals_w))
        counts = jnp.where(counts == 0, jnp.ones_like(counts), counts)
        raster = raster / counts
    return raster                                           # (bs, nf, r0, r1, r2)


def grid_interp(grid, pts):
    # grid: (bs, r0, r1, r2, F); pts: (bs, npts, dim)
    # TODO(synk): data-dependent trilinear gather kept in XLA (only produces
    #             the per-batch shift/scale scalars).
    bs = grid.shape[0]
    size = grid.shape[1:-1]
    ind_n, weights = _corner_setup(pts, size)
    b_idx = jnp.arange(bs)[:, None, None]
    lat = grid[b_idx, ind_n[..., 0], ind_n[..., 1], ind_n[..., 2]]  # (bs, npts, 8, F)
    return jnp.sum(lat * weights[..., None], axis=-2)               # (bs, npts, F)


# ----------------------------------------------------------------------------
# Pallas kernel: fused spectral Poisson solve (tiled, lane-dense, mem-bound).
# ----------------------------------------------------------------------------
def _dpsr_spectral_kernel(ras_re_ref, ras_im_ref, coef_ref, phi_re_ref, phi_im_ref):
    # ras_*_ref: (1, nf, TR, LN); coef_ref: (nf, TR, LN); phi_*_ref: (1, TR, LN)
    nf = coef_ref.shape[0]
    c = coef_ref[0]
    acc_re = ras_im_ref[0, 0] * c
    acc_im = ras_re_ref[0, 0] * c
    for d in range(1, nf):                 # static unroll over the small channel axis
        c = coef_ref[d]
        acc_re = acc_re + ras_im_ref[0, d] * c
        acc_im = acc_im + ras_re_ref[0, d] * c
    phi_re_ref[0] = acc_re
    phi_im_ref[0] = -acc_im
    # DC component is exactly 0 already because coef == 0 at omega == 0.


def _choose_tile_rows(r0, ln, nf, budget_bytes):
    # Bytes per r0-row of pipeline residency: (2*nf in + nf coef + 2 out) blocks,
    # f32, x2 for double buffering.
    per_row = (3 * nf + 2) * ln * 4 * 2
    max_rows = max(1, budget_bytes // per_row)
    if r0 % 8 != 0:
        return r0                      # sublane rule needs the full extent if r0 % 8 != 0
    best = None
    for t in range(8, r0 + 1, 8):      # TR must be a multiple of 8 that divides r0
        if r0 % t == 0 and t <= max_rows:
            best = t
    return best if best is not None else 8


def dpsr_spectral(ras_re, ras_im, coef, *, vmem_budget_bytes=12 * 1024 * 1024):
    """ras_re/ras_im: (bs, nf, r0, r1*rh) f32; coef: (nf, r0, r1*rh) f32.
    Returns (phi_re, phi_im), each (bs, r0, r1*rh) f32."""
    bs, nf, r0, ln = ras_re.shape
    tr = _choose_tile_rows(r0, ln, nf, vmem_budget_bytes)
    n_tiles = r0 // tr

    per_step = (3 * nf + 2) * tr * ln * 4
    vmem_limit = int(min(48 * 1024 * 1024, max(32 * 1024 * 1024, 3 * per_step)))

    elems = bs * r0 * ln
    cost = pl.CostEstimate(
        flops=4 * nf * elems,
        transcendentals=0,
        bytes_accessed=4 * (2 * nf * elems + nf * r0 * ln + 2 * elems),
    )

    out_shape = (jax.ShapeDtypeStruct((bs, r0, ln), jnp.float32),
                 jax.ShapeDtypeStruct((bs, r0, ln), jnp.float32))

    # Grid: (r0 tiles, batch) with batch innermost so the batch-invariant coef
    # block keeps the same block index across consecutive steps (fetched once
    # per spatial tile, not once per (batch, tile)).
    return pl.pallas_call(
        _dpsr_spectral_kernel,
        out_shape=out_shape,
        grid=(n_tiles, bs),
        in_specs=[
            pl.BlockSpec((1, nf, tr, ln), lambda i, b: (b, 0, i, 0)),
            pl.BlockSpec((1, nf, tr, ln), lambda i, b: (b, 0, i, 0)),
            pl.BlockSpec((nf, tr, ln), lambda i, b: (0, i, 0)),
        ],
        out_specs=[
            pl.BlockSpec((1, tr, ln), lambda i, b: (b, i, 0)),
            pl.BlockSpec((1, tr, ln), lambda i, b: (b, i, 0)),
        ],
        compiler_params=pltpu.CompilerParams(
            dimension_semantics=("parallel", "parallel"),
            vmem_limit_bytes=vmem_limit,
        ),
        cost_estimate=cost,
    )(ras_re, ras_im, coef)


# ----------------------------------------------------------------------------
# DPSR module (forward only)
# ----------------------------------------------------------------------------
class DPSR:
    def __init__(self, res, sig=10, scale=True, shift=True, weighted=False):
        self.res = tuple(res)
        self.sig = sig
        self.dim = len(res)
        self.scale = scale
        self.shift = shift
        self.weighted = weighted
        # Fused coefficients: G, 2*pi*omega and 1/(Lap+eps) folded into 3 arrays.
        self.coef = jnp.asarray(dpsr_coefficients_np(self.res, sig))  # (3, r0, r1*rh)
        # Jit the full forward so the XLA glue (rasterize, FFTs, shift/scale)
        # fuses around the Pallas spectral kernel.
        self._forward = jax.jit(self._forward_impl)

    def _forward_impl(self, V, N):
        res = self.res
        r0, r1, r2 = res
        rh = r2 // 2 + 1
        bs = V.shape[0]

        ras_p = point_rasterize(V, N, res, weighted=self.weighted)  # (bs, 3, r0, r1, r2)
        # TODO(synk): FFT (rfftn / irfftn) has no Pallas equivalent; uses XLA FFT.
        ras_s = jnp.fft.rfftn(ras_p, axes=(2, 3, 4))                # (bs, 3, r0, r1, rh)
        # TODO(synk): real/imag (de)interleave of the complex spectrum is done in XLA;
        #             folding the interleaved layout into the kernel needs a lane
        #             even/odd swizzle and is left out for robustness.
        ras_re = jnp.real(ras_s).astype(jnp.float32).reshape(bs, 3, r0, r1 * rh)
        ras_im = jnp.imag(ras_s).astype(jnp.float32).reshape(bs, 3, r0, r1 * rh)

        phi_re, phi_im = dpsr_spectral(ras_re, ras_im, self.coef)
        Phi = lax.complex(phi_re, phi_im).reshape(bs, r0, r1, rh)
        phi = jnp.fft.irfftn(Phi, s=res, axes=(1, 2, 3))            # (bs, r0, r1, r2)

        if self.shift or self.scale:
            fv = grid_interp(phi[..., None], V)[..., 0]             # (bs, npts)
            if self.shift:
                offset = jnp.mean(fv, axis=-1)
                phi = phi - offset[:, None, None, None]
            fv0 = phi[:, 0, 0, 0]                                   # (bs,)  (post-shift)
            if self.scale:
                phi = -phi / jnp.abs(fv0)[:, None, None, None] * 0.5
        return phi

    def __call__(self, V, N):
        assert V.shape == N.shape
        return self._forward(V, N)


if __name__ == "__main__":
    key = jax.random.PRNGKey(0)
    k1, k2 = jax.random.split(key)
    bs, npts = 2, 32
    res = (16, 16, 16)
    V = jax.random.uniform(k1, (bs, npts, 3), dtype=jnp.float32,
                           minval=0.02, maxval=0.98)             # points in (0, 1)
    N = jax.random.normal(k2, (bs, npts, 3), dtype=jnp.float32)  # per-point normals
    model = DPSR(res, sig=10)
    phi = model(V, N)
    phi = jax.block_until_ready(phi)
    assert phi.shape == (bs,) + res
    assert bool(jnp.all(jnp.isfinite(phi)))
    print("KERNEL_OK")
</pallas_src>

<mosaic_0001>
module attributes {stable_mosaic.version = 11 : i64} {
  func.func private @main(%arg0: i32) attributes {dimension_semantics = [#tpu.dimension_semantics<core_parallel>], iteration_bounds = array<i64: 2>, tpu.core_type = #tpu.core_type<sc_scalar_subcore>, window_params = []} {
    return
  }
}

module attributes {stable_mosaic.version = 11 : i64} {
  func.func private @main(%arg0: i32) attributes {dimension_semantics = [#tpu.dimension_semantics<core_parallel>], iteration_bounds = array<i64: 2>, tpu.core_type = #tpu.core_type<sc_scalar_subcore>, window_params = []} {
    return
  }
}

module attributes {stable_mosaic.version = 11 : i64} {
  func.func @_dpsr_spectral_kernel(%arg0: i32, %arg1: i32, %arg2: memref<1x3x16x144xf32, #tpu.memory_space<vmem>>, %arg3: memref<1x3x16x144xf32, #tpu.memory_space<vmem>>, %arg4: memref<3x16x144xf32, #tpu.memory_space<vmem>>, %arg5: memref<1x16x144xf32, #tpu.memory_space<vmem>>, %arg6: memref<1x16x144xf32, #tpu.memory_space<vmem>>) attributes {dimension_semantics = [#tpu.dimension_semantics<parallel>, #tpu.dimension_semantics<parallel>], iteration_bounds = array<i64: 1, 2>, scalar_prefetch = 0 : i64, scratch_operands = 0 : i64, tpu.core_type = #tpu.core_type<tc>, window_params = [{transform_indices = @transform_0, window_bounds = array<i64: 1, 3, 16, 144>}, {transform_indices = @transform_1, window_bounds = array<i64: 1, 3, 16, 144>}, {transform_indices = @transform_2, window_bounds = array<i64: 3, 16, 144>}, {transform_indices = @transform_3, window_bounds = array<i64: 1, 16, 144>}, {transform_indices = @transform_4, window_bounds = array<i64: 1, 16, 144>}]} {
    %c0 = arith.constant 0 : index
    %c0_0 = arith.constant 0 : index
    %c0_1 = arith.constant 0 : index
    %0 = vector.load %arg4[%c0, %c0_0, %c0_1] : memref<3x16x144xf32, #tpu.memory_space<vmem>>, vector<1x16x144xf32>
    %1 = vector.shape_cast %0 : vector<1x16x144xf32> to vector<16x144xf32>
    %c0_2 = arith.constant 0 : index
    %c0_3 = arith.constant 0 : index
    %c0_4 = arith.constant 0 : index
    %c0_5 = arith.constant 0 : index
    %2 = vector.load %arg3[%c0_2, %c0_3, %c0_4, %c0_5] : memref<1x3x16x144xf32, #tpu.memory_space<vmem>>, vector<1x1x16x144xf32>
    %3 = vector.shape_cast %2 : vector<1x1x16x144xf32> to vector<16x144xf32>
    %4 = arith.mulf %3, %1 : vector<16x144xf32>
    %c0_6 = arith.constant 0 : index
    %c0_7 = arith.constant 0 : index
    %c0_8 = arith.constant 0 : index
    %c0_9 = arith.constant 0 : index
    %5 = vector.load %arg2[%c0_6, %c0_7, %c0_8, %c0_9] : memref<1x3x16x144xf32, #tpu.memory_space<vmem>>, vector<1x1x16x144xf32>
    %6 = vector.shape_cast %5 : vector<1x1x16x144xf32> to vector<16x144xf32>
    %7 = arith.mulf %6, %1 : vector<16x144xf32>
    %c1 = arith.constant 1 : index
    %c0_10 = arith.constant 0 : index
    %c0_11 = arith.constant 0 : index
    %8 = vector.load %arg4[%c1, %c0_10, %c0_11] : memref<3x16x144xf32, #tpu.memory_space<vmem>>, vector<1x16x144xf32>
    %9 = vector.shape_cast %8 : vector<1x16x144xf32> to vector<16x144xf32>
    %c0_12 = arith.constant 0 : index
    %c1_13 = arith.constant 1 : index
    %c0_14 = arith.constant 0 : index
    %c0_15 = arith.constant 0 : index
    %10 = vector.load %arg3[%c0_12, %c1_13, %c0_14, %c0_15] : memref<1x3x16x144xf32, #tpu.memory_space<vmem>>, vector<1x1x16x144xf32>
    %11 = vector.shape_cast %10 : vector<1x1x16x144xf32> to vector<16x144xf32>
    %12 = arith.mulf %11, %9 : vector<16x144xf32>
    %13 = arith.addf %4, %12 : vector<16x144xf32>
    %c0_16 = arith.constant 0 : index
    %c1_17 = arith.constant 1 : index
    %c0_18 = arith.constant 0 : index
    %c0_19 = arith.constant 0 : index
    %14 = vector.load %arg2[%c0_16, %c1_17, %c0_18, %c0_19] : memref<1x3x16x144xf32, #tpu.memory_space<vmem>>, vector<1x1x16x144xf32>
    %15 = vector.shape_cast %14 : vector<1x1x16x144xf32> to vector<16x144xf32>
    %16 = arith.mulf %15, %9 : vector<16x144xf32>
    %17 = arith.addf %7, %16 : vector<16x144xf32>
    %c2 = arith.constant 2 : index
    %c0_20 = arith.constant 0 : index
    %c0_21 = arith.constant 0 : index
    %18 = vector.load %arg4[%c2, %c0_20, %c0_21] : memref<3x16x144xf32, #tpu.memory_space<vmem>>, vector<1x16x144xf32>
    %19 = vector.shape_cast %18 : vector<1x16x144xf32> to vector<16x144xf32>
    %c0_22 = arith.constant 0 : index
    %c2_23 = arith.constant 2 : index
    %c0_24 = arith.constant 0 : index
    %c0_25 = arith.constant 0 : index
    %20 = vector.load %arg3[%c0_22, %c2_23, %c0_24, %c0_25] : memref<1x3x16x144xf32, #tpu.memory_space<vmem>>, vector<1x1x16x144xf32>
    %21 = vector.shape_cast %20 : vector<1x1x16x144xf32> to vector<16x144xf32>
    %22 = arith.mulf %21, %19 : vector<16x144xf32>
    %23 = arith.addf %13, %22 : vector<16x144xf32>
    %c0_26 = arith.constant 0 : index
    %c2_27 = arith.constant 2 : index
    %c0_28 = arith.constant 0 : index
    %c0_29 = arith.constant 0 : index
    %24 = vector.load %arg2[%c0_26, %c2_27, %c0_28, %c0_29] : memref<1x3x16x144xf32, #tpu.memory_space<vmem>>, vector<1x1x16x144xf32>
    %25 = vector.shape_cast %24 : vector<1x1x16x144xf32> to vector<16x144xf32>
    %26 = arith.mulf %25, %19 : vector<16x144xf32>
    %27 = arith.addf %17, %26 : vector<16x144xf32>
    %c0_30 = arith.constant 0 : index
    %c0_31 = arith.constant 0 : index
    %c0_32 = arith.constant 0 : index
    %28 = vector.load %arg5[%c0_30, %c0_31, %c0_32] : memref<1x16x144xf32, #tpu.memory_space<vmem>>, vector<1x16x144xf32>
    %29 = vector.shape_cast %28 : vector<1x16x144xf32> to vector<16x144xf32>
    %30 = vector.shape_cast %23 : vector<16x144xf32> to vector<1x16x144xf32>
    tpu.vector_store %arg5[%c0_30, %c0_31, %c0_32], %30 {strides = array<i32>} : memref<1x16x144xf32, #tpu.memory_space<vmem>>, vector<1x16x144xf32>,
    %cst = arith.constant 0.000000e+00 : f32
    %31 = vector.broadcast %cst : f32 to vector<16x144xf32>
    %32 = arith.subf %31, %27 : vector<16x144xf32>
    %c0_33 = arith.constant 0 : index
    %c0_34 = arith.constant 0 : index
    %c0_35 = arith.constant 0 : index
    %33 = vector.load %arg6[%c0_33, %c0_34, %c0_35] : memref<1x16x144xf32, #tpu.memory_space<vmem>>, vector<1x16x144xf32>
    %34 = vector.shape_cast %33 : vector<1x16x144xf32> to vector<16x144xf32>
    %35 = vector.shape_cast %32 : vector<16x144xf32> to vector<1x16x144xf32>
    tpu.vector_store %arg6[%c0_33, %c0_34, %c0_35], %35 {strides = array<i32>} : memref<1x16x144xf32, #tpu.memory_space<vmem>>, vector<1x16x144xf32>,
    return
  }
  func.func @transform_0(%arg0: i32, %arg1: i32) -> (i32, i32, i32, i32) {
    %c0_i32 = arith.constant 0 : i32
    %c0_i32_0 = arith.constant 0 : i32
    %c0_i32_1 = arith.constant 0 : i32
    return %arg1, %c0_i32, %arg0, %c0_i32_0 : i32, i32, i32, i32
  }
  func.func @transform_1(%arg0: i32, %arg1: i32) -> (i32, i32, i32, i32) {
    %c0_i32 = arith.constant 0 : i32
    %c0_i32_0 = arith.constant 0 : i32
    %c0_i32_1 = arith.constant 0 : i32
    return %arg1, %c0_i32, %arg0, %c0_i32_0 : i32, i32, i32, i32
  }
  func.func @transform_2(%arg0: i32, %arg1: i32) -> (i32, i32, i32) {
    %c0_i32 = arith.constant 0 : i32
    %c0_i32_0 = arith.constant 0 : i32
    %c0_i32_1 = arith.constant 0 : i32
    return %c0_i32, %arg0, %c0_i32_0 : i32, i32, i32
  }
  func.func @transform_3(%arg0: i32, %arg1: i32) -> (i32, i32, i32) {
    %c0_i32 = arith.constant 0 : i32
    %c0_i32_0 = arith.constant 0 : i32
    return %arg1, %arg0, %c0_i32 : i32, i32, i32
  }
  func.func @transform_4(%arg0: i32, %arg1: i32) -> (i32, i32, i32) {
    %c0_i32 = arith.constant 0 : i32
    %c0_i32_0 = arith.constant 0 : i32
    return %arg1, %arg0, %c0_i32 : i32, i32, i32
  }
}

</mosaic_0001>

<bundles_post_ra>
// kernel: _forward_impl.1
= control target key start
LH: loop header
LB: loop body
LE: loop exit
PB: predicated region body
PF: predicated region fallthrough
CT: control target
= control target key end

     0   :  { %s729_s15 = smov 0   ;;  %s731_s16 = smov 0   ;;  %s850_s0 = inlined_call_operand.vmem [shape: f32[2,3,16,144], index: 0, kind: input, shape index: {}]   ;;  %s851_s1 = inlined_call_operand.vmem [shape: f32[2,3,16,144], index: 1, kind: input, shape index: {}]   ;;  %s852_s2 = inlined_call_operand.vmem [shape: f32[3,16,144], index: 2, kind: input, shape index: {}]   ;;  %s853_s3 = inlined_call_operand.vmem [shape: f32[2,16,144], index: 3, kind: output, shape index: {0}]   ;;  %s854_s4 = inlined_call_operand.vmem [shape: f32[2,16,144], index: 4, kind: output, shape index: {1}]  }
   0x1   :  { %s733_s17 = smov 0  }
   0x2 LB: > { %s24_s18 = sadd.s32 1, %s698_s16  ;;  %p620_p0 = scmp.ge.s32.totalorder %s702_s17, 1  ;;  %s702_s17 = sphi %s733_s17, %s15_s17   ;;  %s698_s16 = sphi %s731_s16, %s856_s16   ;;  %s694_s15 = sphi %s729_s15, %s855_s15  }
   0x3   : > { %p25_p1 = scmp.ge.s32.totalorder %s24_s18, 2  ;;  %p219_p2 = scmp.lt.s32.totalorder %s702_s17, 3 }
   0x5   : > { %s858_s18 = smov (%p25_p1, %s24_s18), 0  ;;  %p220_p3 = pnand %p620_p0, %p219_p2 }
   0x6   : > { %p282_p4 = scmp.lt.s32.totalorder (!%p220_p3), %s694_s15, 1  ;;  %v332_v0 = vld [vmem:[%s852_s2] sm:$0xff] (!%p220_p3)  ;;  %v333_v3 = vld [vmem:[%s852_s2 + $0x8] sm:$0xff] (!%p220_p3)  ;;  %v334_v9 = vld [vmem:[%s852_s2 + $0x10] sm:$0xff] (!%p220_p3)  ;;  %vm415_vm0 = vcmask (!%p220_p3), 130048  }
   0x7   : > { %223 = sbr.rel (%p220_p3) target bundleno = 37 (0x25), region = 32  ;;  %v627_v1 = vld [vmem:[%s852_s2 + $0x20] sm:$0xff] (!%p220_p3)  ;;  %v628_v4 = vld [vmem:[%s852_s2 + $0x28] sm:$0xff] (!%p220_p3)  ;;  %v629_v10 = vld [vmem:[%s852_s2 + $0x30] sm:$0xff] (!%p220_p3) }
   0x8   : > { %v639_v2 = vld [vmem:[%s852_s2 + $0x40] sm:$0xff] (!%p220_p3)  ;;  %v640_v5 = vld [vmem:[%s852_s2 + $0x48] sm:$0xff] (!%p220_p3)  ;;  %v641_v11 = vld [vmem:[%s852_s2 + $0x50] sm:$0xff] (!%p220_p3) }
   0x9   : > { %v335_v18 = vld [vmem:[%s852_s2 + $0x18] sm:$0xff] (!%p220_p3) }
   0xa   : > { %v630_v19 = vld [vmem:[%s852_s2 + $0x38] sm:$0xff] (!%p220_p3) }
   0xb   : > { %v642_v20 = vld [vmem:[%s852_s2 + $0x58] sm:$0xff] (!%p220_p3) }
   0xe   : > { %s860_s15 = smov (!%p282_p4, %s694_s15), 1 }
   0xf   : > { %s655_s19 = smul.u32 96, %s860_s15  ;;  %s653_s23 = sshll.u32 %s860_s15, 5 }
  0x10   : > { %s814_s6 = scalar_lea.vmem %s853_s3, %s653_s23  ;;  %s330_s8 = scalar_lea.vmem %s854_s4, %s653_s23 }
  0x11   : > { %s762_s28 = scalar_lea.vmem %s851_s1, %s655_s19  ;;  %s788_s22 = scalar_lea.vmem %s850_s0, %s655_s19 }
  0x12   : > { %v336_v6 = vld [vmem:[%s762_s28] sm:$0xff]  ;;  %v337_v15 = vld [vmem:[%s762_s28 + $0x8] sm:$0xff]  ;;  %v338_v24 = vld [vmem:[%s762_s28 + $0x10] sm:$0xff] }
  0x13   : > { %v631_v7 = vld [vmem:[%s762_s28 + $0x20] sm:$0xff]  ;;  %v340_v12 = vmul.f32 %v336_v6, %v332_v0  ;;  %v632_v16 = vld [vmem:[%s762_s28 + $0x28] sm:$0xff]  ;;  %v341_v21 = vmul.f32 %v337_v15, %v333_v3  ;;  %v633_v25 = vld [vmem:[%s762_s28 + $0x30] sm:$0xff]  ;;  %v342_v28 = vmul.f32 %v338_v24, %v334_v9 }
  0x14   : > { %v643_v8 = vld [vmem:[%s762_s28 + $0x40] sm:$0xff]  ;;  %v362_v13 = vmul.f32 %v631_v7, %v627_v1  ;;  %v644_v17 = vld [vmem:[%s762_s28 + $0x48] sm:$0xff]  ;;  %v363_v22 = vmul.f32 %v632_v16, %v628_v4  ;;  %v645_v26 = vld [vmem:[%s762_s28 + $0x50] sm:$0xff]  ;;  %v364_v29 = vmul.f32 %v633_v25, %v629_v10 }
  0x15   : > { %v393_v14 = vmul.f32 %v643_v8, %v639_v2  ;;  %v394_v23 = vmul.f32 %v644_v17, %v640_v5  ;;  %v395_v30 = vmul.f32 %v645_v26, %v641_v11  ;;  %v339_v31 = vld [vmem:[%s762_s28 + $0x18] sm:$0xff]  ;;  %v344_v38 = vld [vmem:[%s788_s22] sm:$0xff]  ;;  %v345_v45 = vld [vmem:[%s788_s22 + $0x8] sm:$0xff] }
  0x16   : > { %v366_v27 = vadd.f32 %v362_v13, %v340_v12  ;;  %v634_v32 = vld [vmem:[%s762_s28 + $0x38] sm:$0xff]  ;;  %v367_v34 = vadd.f32 %v363_v22, %v341_v21  ;;  %v343_v35 = vmul.f32 %v339_v31, %v335_v18  ;;  %v635_v39 = vld [vmem:[%s788_s22 + $0x20] sm:$0xff]  ;;  %v368_v42 = vadd.f32 %v364_v29, %v342_v28  ;;  %v636_v46 = vld [vmem:[%s788_s22 + $0x28] sm:$0xff] }
  0x17   : > { %v646_v33 = vld [vmem:[%s762_s28 + $0x58] sm:$0xff]  ;;  %v365_v36 = vmul.f32 %v634_v32, %v630_v19  ;;  %v647_v40 = vld [vmem:[%s788_s22 + $0x40] sm:$0xff]  ;;  %v348_v43 = vmul.f32 %v344_v38, %v332_v0  ;;  %v375_v44 = vmul.f32 %v635_v39, %v627_v1  ;;  %v648_v47 = vld [vmem:[%s788_s22 + $0x48] sm:$0xff]  ;;  %v349_v51 = vmul.f32 %v345_v45, %v333_v3 }
  0x18   : > { %v396_v37 = vmul.f32 %v646_v33, %v642_v20  ;;  %v397_v41 = vadd.f32 %v393_v14, %v366_v27  ;;  %v398_v48 = vadd.f32 %v394_v23, %v367_v34  ;;  %v406_v50 = vmul.f32 %v647_v40, %v639_v2  ;;  %v346_v52 = vld [vmem:[%s788_s22 + $0x10] sm:$0xff]  ;;  %v347_v59 = vld [vmem:[%s788_s22 + $0x18] sm:$0xff] }
  0x19   : > { %v369_v49 = vadd.f32 %v365_v36, %v343_v35  ;;  %v637_v53 = vld [vmem:[%s788_s22 + $0x30] sm:$0xff]  ;;  %v399_v55 = vadd.f32 %v395_v30, %v368_v42  ;;  %v379_v56 = vadd.f32 %v375_v44, %v348_v43  ;;  %v376_v57 = vmul.f32 %v636_v46, %v628_v4  ;;  %v638_v60 = vld [vmem:[%s788_s22 + $0x38] sm:$0xff] }
  0x1a   : > { %v649_v54 = vld [vmem:[%s788_s22 + $0x50] sm:$0xff]  ;;  %414 = vst [vmem:[%s814_s6] sm:$0xff] %v397_v41  ;;  %v407_v58 = vmul.f32 %v648_v47, %v640_v5  ;;  %v650_v61 = vld [vmem:[%s788_s22 + $0x58] sm:$0xff]  ;;  %416 = vst.msk [vmem:[%s814_s6 + $0x8] sm:$0xff] %vm415_vm0, %v398_v48  ;;  %v350_v63 = vmul.f32 %v346_v52, %v334_v9  ;;  %v377_v0 = vmul.f32 %v637_v53, %v629_v10 }
  0x1b   : > { %v400_v62 = vadd.f32 %v396_v37, %v369_v49  ;;  %v408_v1 = vmul.f32 %v649_v54, %v641_v11  ;;  %417 = vst [vmem:[%s814_s6 + $0x10] sm:$0xff] %v399_v55  ;;  %v410_v2 = vadd.f32 %v406_v50, %v379_v56  ;;  %v380_v3 = vadd.f32 %v376_v57, %v349_v51 }
  0x1c   : > { %v351_v6 = vmul.f32 %v347_v59, %v335_v18  ;;  %v378_v7 = vmul.f32 %v638_v60, %v630_v19  ;;  %v381_v4 = vadd.f32 %v377_v0, %v350_v63  ;;  %v409_v5 = vmul.f32 %v650_v61, %v642_v20 }
  0x1d   : > { %418 = vst.msk [vmem:[%s814_s6 + $0x18] sm:$0xff] %vm415_vm0, %v400_v62  ;;  %v419_v8 = vsub.f32 0.0, %v410_v2  ;;  %v411_v12 = vadd.f32 %v407_v58, %v380_v3 }
  0x1e   : > { %v382_v13 = vadd.f32 %v378_v7, %v351_v6  ;;  %v412_v9 = vadd.f32 %v408_v1, %v381_v4 }
  0x1f   : > { %423 = vst [vmem:[%s330_s8] sm:$0xff] %v419_v8  ;;  %v420_v10 = vsub.f32 0.0, %v411_v12 }
  0x20   : > { %v413_v11 = vadd.f32 %v409_v5, %v382_v13  ;;  %v421_v14 = vsub.f32 0.0, %v412_v9 }
  0x21   : > { %424 = vst.msk [vmem:[%s330_s8 + $0x8] sm:$0xff] %vm415_vm0, %v420_v10 }
  0x22   : > { %v422_v15 = vsub.f32 0.0, %v413_v11  ;;  %425 = vst [vmem:[%s330_s8 + $0x10] sm:$0xff] %v421_v14 }
  0x24   : > { %426 = vst.msk [vmem:[%s330_s8 + $0x18] sm:$0xff] %vm415_vm0, %v422_v15 }
  0x25 PF: > { %s15_s17 = sadd.s32 1, %s702_s17   ;;  %s855_s15 = smov %s698_s16 }
  0x26   : > { %p12_p5 = scmp.ge.s32.totalorder %s15_s17, 4   ;;  %s856_s16 = smov %s858_s18 }
  0x28   :  { %14 = sbr.rel (!%p12_p5) target bundleno = 2 (0x2), region = 86 }

// kernel: reverse.1
= control target key start
LH: loop header
LB: loop body
LE: loop exit
PB: predicated region body
PF: predicated region fallthrough
CT: control target
= control target key end

     0   :  { %s344_s0 = inlined_call_operand.vmem [shape: f32[2,16,16,7], index: 0, kind: input, shape index: {}]   ;;  %s345_s1 = inlined_call_operand.vmem [shape: f32[2,16,16,7], index: 1, kind: output, shape index: {}]  }
   0x1   :  { %v112_v0 = vld [vmem:[%s344_s0 + $0x60] sm:$0xff]  ;;  %v113_v1 = vld [vmem:[%s344_s0 + $0xd0] sm:$0xff]  ;;  %v138_v14 = vld [vmem:[%s344_s0 + $0x68] sm:$0xff] }
   0x2   :  { %v115_v2 = vld [vmem:[%s344_s0 + $0x50] sm:$0xff]  ;;  %4 = vst [vmem:[%s345_s1] sm:$0xff] %v112_v0  ;;  %114 = vst [vmem:[%s345_s1 + $0x70] sm:$0xff] %v113_v1  ;;  %v117_v3 = vld [vmem:[%s344_s0 + $0xc0] sm:$0xff] }
   0x3   :  { %116 = vst [vmem:[%s345_s1 + $0x10] sm:$0xff] %v115_v2  ;;  %v119_v4 = vld [vmem:[%s344_s0 + $0x40] sm:$0xff]  ;;  %v121_v5 = vld [vmem:[%s344_s0 + $0xb0] sm:$0xff]  ;;  %118 = vst [vmem:[%s345_s1 + $0x80] sm:$0xff] %v117_v3 }
   0x4   :  { %120 = vst [vmem:[%s345_s1 + $0x20] sm:$0xff] %v119_v4  ;;  %122 = vst [vmem:[%s345_s1 + $0x90] sm:$0xff] %v121_v5  ;;  %v123_v6 = vld [vmem:[%s344_s0 + $0x30] sm:$0xff]  ;;  %v125_v7 = vld [vmem:[%s344_s0 + $0xa0] sm:$0xff] }
   0x5   :  { %v127_v8 = vld [vmem:[%s344_s0 + $0x20] sm:$0xff]  ;;  %124 = vst [vmem:[%s345_s1 + $0x30] sm:$0xff] %v123_v6  ;;  %126 = vst [vmem:[%s345_s1 + $0xa0] sm:$0xff] %v125_v7  ;;  %v129_v9 = vld [vmem:[%s344_s0 + $0x90] sm:$0xff] }
   0x6   :  { %128 = vst [vmem:[%s345_s1 + $0x40] sm:$0xff] %v127_v8  ;;  %v131_v10 = vld [vmem:[%s344_s0 + $0x10] sm:$0xff]  ;;  %v133_v11 = vld [vmem:[%s344_s0 + $0x80] sm:$0xff]  ;;  %130 = vst [vmem:[%s345_s1 + $0xb0] sm:$0xff] %v129_v9 }
   0x7   :  { %132 = vst [vmem:[%s345_s1 + $0x50] sm:$0xff] %v131_v10  ;;  %134 = vst [vmem:[%s345_s1 + $0xc0] sm:$0xff] %v133_v11  ;;  %v49_v12 = vld [vmem:[%s344_s0] sm:$0xff]  ;;  %v136_v13 = vld [vmem:[%s344_s0 + $0x70] sm:$0xff] }
   0x8   :  { %135 = vst [vmem:[%s345_s1 + $0x60] sm:$0xff] %v49_v12  ;;  %137 = vst [vmem:[%s345_s1 + $0xd0] sm:$0xff] %v136_v13  ;;  %v140_v15 = vld [vmem:[%s344_s0 + $0xd8] sm:$0xff]  ;;  %v144_v17 = vld [vmem:[%s344_s0 + $0xc8] sm:$0xff] }
   0x9   :  { %139 = vst [vmem:[%s345_s1 + $0x8] sm:$0xff] %v138_v14  ;;  %v142_v16 = vld [vmem:[%s344_s0 + $0x58] sm:$0xff]  ;;  %141 = vst [vmem:[%s345_s1 + $0x78] sm:$0xff] %v140_v15  ;;  %v146_v18 = vld [vmem:[%s344_s0 + $0x48] sm:$0xff] }
   0xa   :  { %143 = vst [vmem:[%s345_s1 + $0x18] sm:$0xff] %v142_v16  ;;  %145 = vst [vmem:[%s345_s1 + $0x88] sm:$0xff] %v144_v17  ;;  %v148_v19 = vld [vmem:[%s344_s0 + $0xb8] sm:$0xff]  ;;  %v152_v21 = vld [vmem:[%s344_s0 + $0xa8] sm:$0xff] }
   0xb   :  { %v150_v20 = vld [vmem:[%s344_s0 + $0x38] sm:$0xff]  ;;  %147 = vst [vmem:[%s345_s1 + $0x28] sm:$0xff] %v146_v18  ;;  %149 = vst [vmem:[%s345_s1 + $0x98] sm:$0xff] %v148_v19  ;;  %v154_v22 = vld [vmem:[%s344_s0 + $0x28] sm:$0xff] }
   0xc   :  { %151 = vst [vmem:[%s345_s1 + $0x38] sm:$0xff] %v150_v20  ;;  %v156_v23 = vld [vmem:[%s344_s0 + $0x98] sm:$0xff]  ;;  %153 = vst [vmem:[%s345_s1 + $0xa8] sm:$0xff] %v152_v21  ;;  %v160_v25 = vld [vmem:[%s344_s0 + $0x88] sm:$0xff] }
   0xd   :  { %155 = vst [vmem:[%s345_s1 + $0x48] sm:$0xff] %v154_v22  ;;  %157 = vst [vmem:[%s345_s1 + $0xb8] sm:$0xff] %v156_v23  ;;  %v158_v24 = vld [vmem:[%s344_s0 + $0x18] sm:$0xff]  ;;  %v162_v26 = vld [vmem:[%s344_s0 + $0x8] sm:$0xff] }
   0xe   :  { %159 = vst [vmem:[%s345_s1 + $0x58] sm:$0xff] %v158_v24  ;;  %161 = vst [vmem:[%s345_s1 + $0xc8] sm:$0xff] %v160_v25  ;;  %v164_v27 = vld [vmem:[%s344_s0 + $0x78] sm:$0xff] }
   0xf   :  { %163 = vst [vmem:[%s345_s1 + $0x68] sm:$0xff] %v162_v26  ;;  %165 = vst [vmem:[%s345_s1 + $0xd8] sm:$0xff] %v164_v27 }

</bundles_post_ra>
